<compile_context>
chip_gen: v5e
topology: v5e:2x2
jax: 0.10.0
libtpu: 0.0.40
codegen_flags: <defaults>
</compile_context>

<pallas_src>
import math

import numpy as np

import jax
import jax.numpy as jnp
from jax.experimental import pallas as pl
from jax.experimental.pallas import tpu as pltpu


def _round_up(x, m):
    return ((x + m - 1) // m) * m


def _div_term_np(head_dim, lambda_max, lambda_min):
    """Sinusoidal div_term buffer (f32). Shared by kernel wrapper and references."""
    base = lambda_max / (2.0 * math.pi)
    scale = lambda_min / lambda_max
    exponent = np.arange(0, head_dim, 2, dtype=np.float64) / head_dim
    return (base * scale ** exponent).astype(np.float32)          # (head_dim // 2,)


def _consts_np(head_dim, groups, lambda_max, lambda_min):
    """(2, groups*head_dim) f32 constant: row 0 = 1/div_term tiled per lane,
    row 1 = cos-lane mask (1.0 on the cos half of every head_dim block)."""
    half = head_dim // 2
    div = _div_term_np(head_dim, lambda_max, lambda_min)
    inv = (1.0 / div.astype(np.float64)).astype(np.float32)       # correctly-rounded recip
    inv_block = np.concatenate([inv, inv])                                    # (head_dim,)
    msk_block = np.concatenate([np.zeros(half, np.float32), np.ones(half, np.float32)])
    return np.stack([np.tile(inv_block, groups), np.tile(msk_block, groups)], axis=0)


def _make_kernel(tile, groups, head_dim):
    def kernel(mz_ref, const_ref, out_ref):
        # mz_ref:    (tile, groups)            f32  (groups logical rows per stored row)
        # const_ref: (2, groups*head_dim)      f32  (row0 inv_div, row1 cos mask)
        # out_ref:   (tile, groups*head_dim)   output dtype (lane-dense)
        inv_div = const_ref[0:1, :]                                # (1, W)
        cos_mask = const_ref[1:2, :]                               # (1, W)
        mz = mz_ref[...]                                           # (tile, groups)
        if groups == 1:
            mz_lanes = mz                                          # (tile, 1) -> broadcasts
        else:
            # Expand each logical row's m/z across its head_dim lanes:
            # lanes [g*head_dim : (g+1)*head_dim) <- mz[:, g].  broadcast + lane-concat
            # (XLU/VPU work in otherwise idle slots; avoids reshape-relayout risk).
            mz_lanes = jnp.concatenate(
                [jnp.broadcast_to(mz[:, g:g + 1], (tile, head_dim)) for g in range(groups)],
                axis=-1)                                           # (tile, W)
        phase = mz_lanes * inv_div                                 # (tile, W) f32
        pe = jnp.where(cos_mask != 0.0, jnp.cos(phase), jnp.sin(phase))
        out_ref[...] = pe.astype(out_ref.dtype)                    # one lane-dense store
    return kernel


def relative_input_embedding(moverz, *, hidden_size, num_heads,
                             lambda_max, lambda_min,
                             output_dtype=jnp.float32, tile_stored_rows=2048):
    head_dim = hidden_size // num_heads
    assert head_dim % 2 == 0
    out_dt = jnp.dtype(output_dtype)

    # Lane packing factor: pack G logical rows per stored 128-wide row when possible.
    if head_dim < 128 and 128 % head_dim == 0:
        groups = 128 // head_dim
    else:
        groups = 1
    lane_w = groups * head_dim

    consts = jnp.asarray(_consts_np(head_dim, groups, lambda_max, lambda_min))

    lead_shape = moverz.shape
    n = int(np.prod(lead_shape)) if lead_shape else 1

    # Sublane multiple for the (tile, lane_w) output block.
    sub = {4: 8, 2: 16, 1: 32}.get(out_dt.itemsize, 8)

    r_min = pl.cdiv(n, groups)                       # stored rows needed
    # Big tiles amortize the ~0.35us/step pipeline overhead, but keep >= 2 grid
    # steps whenever there is enough work so v7x can split rows across its 2 TCs.
    tile = min(int(tile_stored_rows), _round_up(pl.cdiv(r_min, 2), sub))
    tile = max(sub, _round_up(tile, sub))
    steps = pl.cdiv(r_min, tile)
    r_pad = steps * tile
    n_pad = r_pad * groups

    mz_flat = moverz.reshape(n).astype(jnp.float32)
    if n_pad != n:
        mz_flat = jnp.pad(mz_flat, (0, n_pad - n))   # padding rows -> sin(0)/cos(0), sliced off
    mz2d = mz_flat.reshape(r_pad, groups)

    cost = pl.CostEstimate(
        flops=3 * r_pad * lane_w,
        transcendentals=2 * r_pad * lane_w,          # sin + cos over all lanes
        bytes_accessed=r_pad * groups * 4 + int(consts.size) * 4
        + r_pad * lane_w * out_dt.itemsize,
    )

    out = pl.pallas_call(
        _make_kernel(tile, groups, head_dim),
        out_shape=jax.ShapeDtypeStruct((r_pad, lane_w), out_dt),
        grid_spec=pltpu.PrefetchScalarGridSpec(
            num_scalar_prefetch=0,
            grid=(steps,),
            in_specs=[
                pl.BlockSpec((tile, groups), lambda i: (i, 0)),
                # Tiny constant block, same block index every step.
                pl.BlockSpec((2, lane_w), lambda i: (0, 0)),
            ],
            out_specs=pl.BlockSpec((tile, lane_w), lambda i: (i, 0)),
        ),
        compiler_params=pltpu.CompilerParams(
            dimension_semantics=("parallel",)),
        cost_estimate=cost,
    )(mz2d, consts)

    # Un-pack the lane-dense slab (free, contiguous), drop padding, restore shape.
    pe = out.reshape(r_pad * groups, head_dim)[:n].reshape(*lead_shape, head_dim)
    # stack(dim=-2) + repeat_interleave(num_heads) of a size-1 axis is a pure
    # broadcast; keep it lazy instead of writing num_heads identical copies.
    return jnp.broadcast_to(pe[..., None, :], lead_shape + (num_heads, head_dim))


# ----------------------------- references & checks -----------------------------

def _reference_module(moverz, *, hidden_size, num_heads, lambda_max, lambda_min,
                      output_dtype, **_):
    """Literal port of the torch module (f32 divide, concat sin/cos, head broadcast)."""
    head_dim = hidden_size // num_heads
    div = jnp.asarray(_div_term_np(head_dim, lambda_max, lambda_min))
    phase = moverz.astype(jnp.float32)[..., None] / div
    pe = jnp.concatenate([jnp.sin(phase), jnp.cos(phase)], axis=-1).astype(output_dtype)
    rel = pe[..., None, :]
    return jnp.broadcast_to(rel, rel.shape[:-2] + (num_heads, head_dim))


def _reference_same_phase(moverz, *, hidden_size, num_heads, lambda_max, lambda_min,
                          output_dtype, **_):
    """Same embedding, but using the identical correctly-rounded reciprocal the
    kernel uses -> phases bit-match the kernel; tight check of the kernel machinery."""
    head_dim = hidden_size // num_heads
    div = _div_term_np(head_dim, lambda_max, lambda_min)
    inv = jnp.asarray((1.0 / div.astype(np.float64)).astype(np.float32))
    phase = moverz.astype(jnp.float32)[..., None] * inv
    pe = jnp.concatenate([jnp.sin(phase), jnp.cos(phase)], axis=-1).astype(output_dtype)
    rel = pe[..., None, :]
    return jnp.broadcast_to(rel, rel.shape[:-2] + (num_heads, head_dim))


def _check(moverz, **kw):
    out = relative_input_embedding(moverz, **kw)
    jax.block_until_ready(out)

    out_dt = jnp.dtype(kw["output_dtype"])
    tight = 1e-2 if out_dt.itemsize == 2 else 1e-4   # bf16 needs a bf16-sized tolerance

    ref_a = _reference_same_phase(moverz, **kw)
    assert out.shape == ref_a.shape
    assert jnp.allclose(out.astype(jnp.float32), ref_a.astype(jnp.float32),
                        atol=tight, rtol=tight)

    # Module-literal (divide-based) reference: at these phase magnitudes the f32
    # embedding is only defined up to a few ulps of the phase, so bound the
    # tolerance by the phase conditioning (ulp(max_phase) ~ 0.03 rad here).
    head_dim = kw["hidden_size"] // kw["num_heads"]
    div = _div_term_np(head_dim, kw["lambda_max"], kw["lambda_min"])
    max_phase = float(np.max(np.abs(np.asarray(moverz, dtype=np.float64)))) / float(div.min())
    cond_tol = 4.0 * float(np.spacing(np.float32(max_phase))) + tight
    ref_b = _reference_module(moverz, **kw)
    assert jnp.allclose(out.astype(jnp.float32), ref_b.astype(jnp.float32),
                        atol=cond_tol, rtol=tight)
    return out


if __name__ == "__main__":
    key = jax.random.PRNGKey(0)
    hidden_size, num_heads = 32, 4          # head_dim = 8 -> lane packing G = 16
    lambda_max, lambda_min = 1e4, 1e-3
    kw = dict(hidden_size=hidden_size, num_heads=num_heads,
              lambda_max=lambda_max, lambda_min=lambda_min,
              output_dtype=jnp.float32)

    k1, k2 = jax.random.split(key)

    # Small shape consistent with the module (single grid step, padding path).
    moverz = jax.random.uniform(k1, (2, 8), jnp.float32, 0.0, 2000.0)
    out = _check(moverz, **kw)
    assert out.shape == (2, 8, num_heads, hidden_size // num_heads)

    # Ragged shape exercising row padding AND a multi-step grid (>= 2 steps).
    moverz2 = jax.random.uniform(k2, (4, 130), jnp.float32, 0.0, 2000.0)
    _check(moverz2, **kw)

    # bf16 output path (f32 compute, cast at the lane-dense store; 16-row sublane tiles).
    kw_bf16 = dict(kw, output_dtype=jnp.bfloat16)
    _check(moverz2, **kw_bf16)

    print("KERNEL_OK")
</pallas_src>

<mosaic_0001>
module attributes {stable_mosaic.version = 11 : i64} {
  func.func @kernel(%arg0: i32, %arg1: memref<8x16xf32, #tpu.memory_space<vmem>>, %arg2: memref<2x128xf32, #tpu.memory_space<vmem>>, %arg3: memref<8x128xf32, #tpu.memory_space<vmem>>) attributes {dimension_semantics = [#tpu.dimension_semantics<parallel>], iteration_bounds = array<i64: 1>, scalar_prefetch = 0 : i64, scratch_operands = 0 : i64, tpu.core_type = #tpu.core_type<tc>, window_params = [{transform_indices = @transform_0, window_bounds = array<i64: 8, 16>}, {pipeline_mode = #tpu.pipeline_mode<synchronous>, transform_indices = @transform_1, window_bounds = array<i64: 2, 128>}, {transform_indices = @transform_2, window_bounds = array<i64: 8, 128>}]} {
    %c0 = arith.constant 0 : index
    %c0_0 = arith.constant 0 : index
    %0 = vector.load %arg2[%c0, %c0_0] : memref<2x128xf32, #tpu.memory_space<vmem>>, vector<1x128xf32>
    %c1 = arith.constant 1 : index
    %c0_1 = arith.constant 0 : index
    %1 = vector.load %arg2[%c1, %c0_1] : memref<2x128xf32, #tpu.memory_space<vmem>>, vector<1x128xf32>
    %c0_2 = arith.constant 0 : index
    %c0_3 = arith.constant 0 : index
    %2 = vector.load %arg1[%c0_2, %c0_3] : memref<8x16xf32, #tpu.memory_space<vmem>>, vector<8x16xf32>
    %3 = vector.extract_strided_slice %2 {offsets = [0, 0], sizes = [8, 1], strides = [1, 1]} : vector<8x16xf32> to vector<8x1xf32>
    %4 = vector.shape_cast %3 : vector<8x1xf32> to vector<8x1xf32>
    %5 = vector.broadcast %4 : vector<8x1xf32> to vector<8x8xf32>
    %6 = vector.extract_strided_slice %2 {offsets = [0, 1], sizes = [8, 1], strides = [1, 1]} : vector<8x16xf32> to vector<8x1xf32>
    %7 = vector.shape_cast %6 : vector<8x1xf32> to vector<8x1xf32>
    %8 = vector.broadcast %7 : vector<8x1xf32> to vector<8x8xf32>
    %9 = vector.extract_strided_slice %2 {offsets = [0, 2], sizes = [8, 1], strides = [1, 1]} : vector<8x16xf32> to vector<8x1xf32>
    %10 = vector.shape_cast %9 : vector<8x1xf32> to vector<8x1xf32>
    %11 = vector.broadcast %10 : vector<8x1xf32> to vector<8x8xf32>
    %12 = vector.extract_strided_slice %2 {offsets = [0, 3], sizes = [8, 1], strides = [1, 1]} : vector<8x16xf32> to vector<8x1xf32>
    %13 = vector.shape_cast %12 : vector<8x1xf32> to vector<8x1xf32>
    %14 = vector.broadcast %13 : vector<8x1xf32> to vector<8x8xf32>
    %15 = vector.extract_strided_slice %2 {offsets = [0, 4], sizes = [8, 1], strides = [1, 1]} : vector<8x16xf32> to vector<8x1xf32>
    %16 = vector.shape_cast %15 : vector<8x1xf32> to vector<8x1xf32>
    %17 = vector.broadcast %16 : vector<8x1xf32> to vector<8x8xf32>
    %18 = vector.extract_strided_slice %2 {offsets = [0, 5], sizes = [8, 1], strides = [1, 1]} : vector<8x16xf32> to vector<8x1xf32>
    %19 = vector.shape_cast %18 : vector<8x1xf32> to vector<8x1xf32>
    %20 = vector.broadcast %19 : vector<8x1xf32> to vector<8x8xf32>
    %21 = vector.extract_strided_slice %2 {offsets = [0, 6], sizes = [8, 1], strides = [1, 1]} : vector<8x16xf32> to vector<8x1xf32>
    %22 = vector.shape_cast %21 : vector<8x1xf32> to vector<8x1xf32>
    %23 = vector.broadcast %22 : vector<8x1xf32> to vector<8x8xf32>
    %24 = vector.extract_strided_slice %2 {offsets = [0, 7], sizes = [8, 1], strides = [1, 1]} : vector<8x16xf32> to vector<8x1xf32>
    %25 = vector.shape_cast %24 : vector<8x1xf32> to vector<8x1xf32>
    %26 = vector.broadcast %25 : vector<8x1xf32> to vector<8x8xf32>
    %27 = vector.extract_strided_slice %2 {offsets = [0, 8], sizes = [8, 1], strides = [1, 1]} : vector<8x16xf32> to vector<8x1xf32>
    %28 = vector.shape_cast %27 : vector<8x1xf32> to vector<8x1xf32>
    %29 = vector.broadcast %28 : vector<8x1xf32> to vector<8x8xf32>
    %30 = vector.extract_strided_slice %2 {offsets = [0, 9], sizes = [8, 1], strides = [1, 1]} : vector<8x16xf32> to vector<8x1xf32>
    %31 = vector.shape_cast %30 : vector<8x1xf32> to vector<8x1xf32>
    %32 = vector.broadcast %31 : vector<8x1xf32> to vector<8x8xf32>
    %33 = vector.extract_strided_slice %2 {offsets = [0, 10], sizes = [8, 1], strides = [1, 1]} : vector<8x16xf32> to vector<8x1xf32>
    %34 = vector.shape_cast %33 : vector<8x1xf32> to vector<8x1xf32>
    %35 = vector.broadcast %34 : vector<8x1xf32> to vector<8x8xf32>
    %36 = vector.extract_strided_slice %2 {offsets = [0, 11], sizes = [8, 1], strides = [1, 1]} : vector<8x16xf32> to vector<8x1xf32>
    %37 = vector.shape_cast %36 : vector<8x1xf32> to vector<8x1xf32>
    %38 = vector.broadcast %37 : vector<8x1xf32> to vector<8x8xf32>
    %39 = vector.extract_strided_slice %2 {offsets = [0, 12], sizes = [8, 1], strides = [1, 1]} : vector<8x16xf32> to vector<8x1xf32>
    %40 = vector.shape_cast %39 : vector<8x1xf32> to vector<8x1xf32>
    %41 = vector.broadcast %40 : vector<8x1xf32> to vector<8x8xf32>
    %42 = vector.extract_strided_slice %2 {offsets = [0, 13], sizes = [8, 1], strides = [1, 1]} : vector<8x16xf32> to vector<8x1xf32>
    %43 = vector.shape_cast %42 : vector<8x1xf32> to vector<8x1xf32>
    %44 = vector.broadcast %43 : vector<8x1xf32> to vector<8x8xf32>
    %45 = vector.extract_strided_slice %2 {offsets = [0, 14], sizes = [8, 1], strides = [1, 1]} : vector<8x16xf32> to vector<8x1xf32>
    %46 = vector.shape_cast %45 : vector<8x1xf32> to vector<8x1xf32>
    %47 = vector.broadcast %46 : vector<8x1xf32> to vector<8x8xf32>
    %48 = vector.extract_strided_slice %2 {offsets = [0, 15], sizes = [8, 1], strides = [1, 1]} : vector<8x16xf32> to vector<8x1xf32>
    %49 = vector.shape_cast %48 : vector<8x1xf32> to vector<8x1xf32>
    %50 = vector.broadcast %49 : vector<8x1xf32> to vector<8x8xf32>
    %51 = tpu.concatenate %5, %8, %11, %14, %17, %20, %23, %26, %29, %32, %35, %38, %41, %44, %47, %50 in 1 : vector<8x8xf32>, vector<8x8xf32>, vector<8x8xf32>, vector<8x8xf32>, vector<8x8xf32>, vector<8x8xf32>, vector<8x8xf32>, vector<8x8xf32>, vector<8x8xf32>, vector<8x8xf32>, vector<8x8xf32>, vector<8x8xf32>, vector<8x8xf32>, vector<8x8xf32>, vector<8x8xf32>, vector<8x8xf32> -> vector<8x128xf32>
    %52 = vector.broadcast %0 : vector<1x128xf32> to vector<8x128xf32>
    %53 = arith.mulf %51, %52 : vector<8x128xf32>
    %cst = arith.constant 0.000000e+00 : f32
    %54 = vector.broadcast %cst : f32 to vector<1x128xf32>
    %55 = arith.cmpf one, %1, %54 : vector<1x128xf32>
    %56 = math.cos %53 : vector<8x128xf32>
    %57 = math.sin %53 : vector<8x128xf32>
    %58 = vector.shape_cast %55 : vector<1x128xi1> to vector<1x128xi1>
    %59 = vector.broadcast %58 : vector<1x128xi1> to vector<8x128xi1>
    %60 = arith.select %59, %56, %57 : vector<8x128xi1>, vector<8x128xf32>
    %c0_4 = arith.constant 0 : index
    %c0_5 = arith.constant 0 : index
    %61 = vector.load %arg3[%c0_4, %c0_5] : memref<8x128xf32, #tpu.memory_space<vmem>>, vector<8x128xf32>
    tpu.vector_store %arg3[%c0_4, %c0_5], %60 {strides = array<i32>} : memref<8x128xf32, #tpu.memory_space<vmem>>, vector<8x128xf32>,
    return
  }
  func.func @transform_0(%arg0: i32) -> (i32, i32) {
    %c0_i32 = arith.constant 0 : i32
    %c0_i32_0 = arith.constant 0 : i32
    return %arg0, %c0_i32 : i32, i32
  }
  func.func @transform_1(%arg0: i32) -> (i32, i32) {
    %c0_i32 = arith.constant 0 : i32
    %c0_i32_0 = arith.constant 0 : i32
    %c0_i32_1 = arith.constant 0 : i32
    return %c0_i32, %c0_i32_0 : i32, i32
  }
  func.func @transform_2(%arg0: i32) -> (i32, i32) {
    %c0_i32 = arith.constant 0 : i32
    %c0_i32_0 = arith.constant 0 : i32
    return %arg0, %c0_i32 : i32, i32
  }
}

</mosaic_0001>

<bundles_post_ra>
// kernel: tpu_custom_call.1
= control target key start
LH: loop header
LB: loop body
LE: loop exit
PB: predicated region body
PF: predicated region fallthrough
CT: control target
= control target key end

     0   :  { %7 = vsyncpa [#allocation3], 0  ;;  %s718_s0 = inlined_call_operand.hbm [shape: f32[8,16], index: 0, kind: input, shape index: {}]   ;;  %s719_s1 = inlined_call_operand.hbm [shape: f32[2,128], index: 1, kind: input, shape index: {}]   ;;  %s720_s2 = inlined_call_operand.hbm [shape: f32[8,128], index: 2, kind: output, shape index: {}]  }
   0x1   :  { %8 = vsyncpa [#allocation6], 0 }
   0x2   :  { %9 = vsyncpa [#allocation4], 0  ;;  %s15_s11 = sshll.u32 %s718_s0, 4  ;;  %s600_s12 = smov [#allocation2]   ;;  %s16_s11 = int_to_ptr.hbm [resolvable:$true] %s15_s11 }
   0x3   :  { %s17_s13 = sshll.u32 %s600_s12, 4  ;;  %s26_s16 = sshll.u32 %s719_s1, 4  ;;  %s18_s13 = int_to_ptr.vmem [resolvable:$true] %s17_s13  ;;  %s27_s16 = int_to_ptr.hbm [resolvable:$true] %s26_s16 }
   0x4   :  { %20 = dma.hbm_to_vmem [thread:$0]  %s16_s11, 128, %s18_s13, [#allocation3]  }
   0x5   :  { %s601_s17 = smov [#allocation5]  }
   0x6   :  { %s28_s18 = sshll.u32 %s601_s17, 4  ;;  %s29_s18 = int_to_ptr.vmem [resolvable:$true] %s28_s18 }
   0x7   :  { %31 = dma.hbm_to_vmem [thread:$0]  %s27_s16, 32, %s29_s18, [#allocation6]  }
   0x8   :  { %594 = dma.done.wait [#allocation3], 128  }
   0x9   :  { %595 = vsyncadd [#allocation3], 4294967168 }
   0xa   :  { %596 = dma.done.wait [#allocation6], 32  }
   0xb   :  { %597 = vsyncadd [#allocation6], 4294967264  ;;  %v602_v0 = vmov 2   ;;  %v603_v1 = vmov 0   ;;  %v604_v2 = vmov 4   ;;  %v42_v3 = vld [vmem:[#allocation2] sm:$0xff] }
   0xc   :  { %506 = vset.pattern.permute.xlu1 %v602_v0  ;;  %504 = vset.pattern.permute.xlu0 %v603_v1  ;;  %v605_v4 = vmov 3   ;;  %v606_v5 = vmov 1   ;;  %v607_v6 = vmov 5   ;;  %v608_v7 = vmov 6   ;;  %v521_v44 = vld [vmem:[#allocation5] ss:$0 sm:$0xff] }
   0xd   :  { %508 = vset.pattern.permute.xlu2 %v604_v2  ;;  %53 = vperm.xlu1 %506, %v42_v3   ;;  %v609_v8 = vmov 8   ;;  %v610_v9 = vmov 7   ;;  %v611_v10 = vmov 9   ;;  %v612_v11 = vmov 13   ;;  %s624_s0 = smov [#allocation7]   ;;  %s462_s21 = sshll.u32 %s720_s2, 4  ;;  %s463_s21 = int_to_ptr.hbm [resolvable:$true] %s462_s21 }
   0xe   :  { %45 = vperm.xlu0 %504, %v42_v3   ;;  %61 = vperm.xlu2 %508, %v42_v3   ;;  %v613_v12 = vmov 10   ;;  %v614_v13 = vmov 11   ;;  %v615_v14 = vmov 15   ;;  %v616_v15 = vmov 12   ;;  %s460_s1 = sshll.u32 %s624_s0, 4  ;;  %s461_s1 = int_to_ptr.vmem [resolvable:$true] %s460_s1 }
   0xf   :  { %v617_v16 = vmov 14   ;;  %vm108_vm0 = vcmask 64512   ;;  %vm110_vm1 = vcmask 130048   ;;  %vm112_vm2 = vcmask 195584  }
  0x10   :  { %vm114_vm3 = vcmask 261120   ;;  %vm116_vm4 = vcmask 326656   ;;  %vm118_vm5 = vcmask 392192   ;;  %vm120_vm6 = vcmask 457728  }
  0x11   :  { %vm122_vm7 = vcmask 523264   ;;  %vm124_vm8 = vcmask 588800   ;;  %vm126_vm9 = vcmask 654336   ;;  %vm128_vm10 = vcmask 719872  }
  0x12   :  { %vm130_vm11 = vcmask 785408   ;;  %vm132_vm12 = vcmask 850944   ;;  %vm134_vm13 = vcmask 916480   ;;  %vm136_vm14 = vcmask 982016  }
  0x13   :  { %v618_v61 = vmov 683565275   ;;  %v619_v63 = vmov 2475754826  }
  0x15   :  { %507 = vset.pattern.permute.xlu1 %v605_v4 }
  0x16   :  { %505 = vset.pattern.permute.xlu0 %v606_v5  ;;  %57 = vperm.xlu1 %507, %v42_v3  }
  0x17   :  { %49 = vperm.xlu0 %505, %v42_v3   ;;  %509 = vset.pattern.permute.xlu2 %v607_v6  ;;  %v621_v6 = vmov 2102212464  }
  0x18   :  { %65 = vperm.xlu2 %509, %v42_v3  }
  0x1e   :  { %510 = vset.pattern.permute.xlu1 %v608_v7 }
  0x1f   :  { %512 = vset.pattern.permute.xlu0 %v609_v8  ;;  %69 = vperm.xlu1 %510, %v42_v3  }
  0x20   :  { %77 = vperm.xlu0 %512, %v42_v3   ;;  %511 = vset.pattern.permute.xlu2 %v610_v9  ;;  %v622_v9 = vmov 920167782  }
  0x21   :  { %73 = vperm.xlu2 %511, %v42_v3  }
  0x27   :  { %513 = vset.pattern.permute.xlu1 %v611_v10 }
  0x28   :  { %517 = vset.pattern.permute.xlu0 %v612_v11  ;;  %81 = vperm.xlu1 %513, %v42_v3  }
  0x29   :  { %97 = vperm.xlu0 %517, %v42_v3   ;;  %514 = vset.pattern.permute.xlu2 %v613_v12  ;;  %v623_v12 = vmov 1326507024  }
  0x2a   :  { %85 = vperm.xlu2 %514, %v42_v3  }
  0x30   :  { %515 = vset.pattern.permute.xlu1 %v614_v13 }
  0x31   :  { %520 = vset.pattern.permute.xlu0 %v615_v14  ;;  %89 = vperm.xlu1 %515, %v42_v3  }
  0x32   :  { %516 = vset.pattern.permute.xlu2 %v616_v15 }
  0x33   :  { %93 = vperm.xlu2 %516, %v42_v3  }
  0x39   :  { %518 = vset.pattern.permute.xlu1 %v617_v16 }
  0x3a   :  { %101 = vperm.xlu1 %518, %v42_v3  }
  0x3b   :  { %519 = vset.pattern.permute.xlu2 %v615_v14 }
  0x3c   :  { %105 = vperm.xlu2 %519, %v42_v3   ;;  %v620_v3 = vmov 2131351028  }
  0x68   :  { %v62_v17 = vpop.permute.xlu2 %61 }
  0x72   :  { %v66_v20 = vpop.permute.xlu2 %65 }
  0x7b   :  { %v74_v23 = vpop.permute.xlu2 %73 }
  0x7f   :  { %v54_v18 = vpop.permute.xlu1 %53 }
  0x80   :  { %v46_v19 = vpop.permute.xlu0 %45 }
  0x84   :  { %v86_v29 = vpop.permute.xlu2 %85 }
  0x88   :  { %v58_v21 = vpop.permute.xlu1 %57 }
  0x89   :  { %v50_v22 = vpop.permute.xlu0 %49 }
  0x8a   :  { %v109_v24 = vsel %vm108_vm0, %v46_v19, %v50_v22 }
  0x8b   :  { %v111_v25 = vsel %vm110_vm1, %v109_v24, %v54_v18 }
  0x8c   :  { %v113_v27 = vsel %vm112_vm2, %v111_v25, %v58_v21 }
  0x8d   :  { %v115_v28 = vsel %vm114_vm3, %v113_v27, %v62_v17  ;;  %v94_v36 = vpop.permute.xlu2 %93 }
  0x8e   :  { %v117_v30 = vsel %vm116_vm4, %v115_v28, %v66_v20 }
  0x91   :  { %v70_v26 = vpop.permute.xlu1 %69 }
  0x92   :  { %v119_v32 = vsel %vm118_vm5, %v117_v30, %v70_v26  ;;  %v78_v34 = vpop.permute.xlu0 %77 }
  0x93   :  { %v121_v33 = vsel %vm120_vm6, %v119_v32, %v74_v23 }
  0x94   :  { %v123_v35 = vsel %vm122_vm7, %v121_v33, %v78_v34 }
  0x96   :  { %v106_v43 = vpop.permute.xlu2 %105 }
  0x9a   :  { %v82_v31 = vpop.permute.xlu1 %81 }
  0x9b   :  { %v125_v37 = vsel %vm124_vm8, %v123_v35, %v82_v31  ;;  %v98_v42 = vpop.permute.xlu0 %97 }
  0x9c   :  { %v127_v39 = vsel %vm126_vm9, %v125_v37, %v86_v29 }
  0xa3   :  { %v90_v38 = vpop.permute.xlu1 %89 }
  0xa4   :  { %v129_v40 = vsel %vm128_vm10, %v127_v39, %v90_v38 }
  0xa5   :  { %v131_v41 = vsel %vm130_vm11, %v129_v40, %v94_v36 }
  0xa6   :  { %v133_v45 = vsel %vm132_vm12, %v131_v41, %v98_v42 }
  0xac   :  { %v102_v46 = vpop.permute.xlu1 %101 }
  0xad   :  { %v135_v47 = vsel %vm134_vm13, %v133_v45, %v102_v46 }
  0xae   :  { %v137_v48 = vsel %vm136_vm14, %v135_v47, %v106_v43 }
  0xaf   :  { %v647_v49 = vmul.f32 %v521_v44, %v137_v48 }
  0xb1   :  { %v144_v50 = vand.u32 2139095040, %v647_v49  ;;  %v141_v53 = vand.u32 2147483647, %v647_v49  ;;  %vm143_vm11 = vcmp.lt.s32.totalorder %v647_v49, 0 }
  0xb3   :  { %v145_v51 = vshrl.u32 %v144_v50, 23  ;;  %v148_v55 = vand.u32 8388607, %v141_v53  ;;  %vm142_vm12 = vcmp.le.f32.partialorder %v141_v53, 0.7853982 }
  0xb5   :  { %v473_v52 = vadd.s32 4294967169, %v145_v51  ;;  %v149_v59 = vor.u32 8388608, %v148_v55 }
  0xb7   :  { %v151_v54 = vadd.s32 1, %v473_v52  ;;  %v664_v19 = vshll.u32 %v149_v59, 8 }
  0xb9   :  { %vm152_vm15 = vcmp.gt.s32.totalorder %v151_v54, 0  ;;  %v190_v28 = vand.u32 65535, %v664_v19  ;;  %v191_v29 = vshrl.u32 %v664_v19, 16 }
  0xba   :  { %v153_v56 = vsel %vm152_vm15, %v151_v54, 0 }
  0xbb   :  { %v155_v57 = vand.u32 31, %v153_v56  ;;  %v655_v60 = vshrl.u32 %v153_v56, 5 }
  0xbd   :  { %v653_v58 = vsub.s32 32, %v155_v57  ;;  %v158_v62 = vshll.u32 %v618_v61, %v155_v57  ;;  %v161_v0 = vshll.u32 %v619_v63, %v155_v57  ;;  %v164_v5 = vshll.u32 %v620_v3, %v155_v57 }
  0xbe   :  { %v167_v8 = vshll.u32 %v621_v6, %v155_v57  ;;  %v170_v11 = vshll.u32 %v622_v9, %v155_v57  ;;  %vm173_vm0 = vcmp.lt.s32.totalorder %v655_v60, 1  ;;  %vm176_vm1 = vcmp.lt.s32.totalorder %v655_v60, 4 }
  0xbf   :  { %v159_v2 = vshrl.u32 %v619_v63, %v653_v58  ;;  %v162_v4 = vshrl.u32 %v620_v3, %v653_v58  ;;  %v165_v7 = vshrl.u32 %v621_v6, %v653_v58  ;;  %v168_v10 = vshrl.u32 %v622_v9, %v653_v58 }
  0xc0   :  { %v171_v13 = vshrl.u32 %v623_v12, %v653_v58  ;;  %vm175_vm2 = vcmp.lt.s32.totalorder %v655_v60, 3  ;;  %vm174_vm3 = vcmp.lt.s32.totalorder %v655_v60, 2  ;;  %v157_v56 = vshrl.u32 %v618_v61, %v653_v58 }
  0xc1   :  { %v160_v14 = vor.u32 %v159_v2, %v158_v62  ;;  %v163_v15 = vor.u32 %v162_v4, %v161_v0  ;;  %v166_v16 = vor.u32 %v165_v7, %v164_v5  ;;  %v169_v17 = vor.u32 %v168_v10, %v167_v8 }
  0xc2   :  { %v172_v18 = vor.u32 %v171_v13, %v170_v11 }
  0xc3   :  { %v181_v20 = vsel %vm173_vm0, %v160_v14, %v163_v15  ;;  %v185_v21 = vsel %vm173_vm0, %v163_v15, %v166_v16  ;;  %v182_v22 = vsel %vm176_vm1, %v169_v17, 920167782  ;;  %v178_v52 = vsel %vm176_vm1, %v166_v16, 2102212464 }
  0xc4   :  { %v186_v23 = vsel %vm176_vm1, %v172_v18, 1326507024  ;;  %v183_v24 = vsel %vm175_vm2, %v166_v16, %v182_v22  ;;  %v177_v2 = vsel %vm173_vm0, %v157_v56, %v160_v14  ;;  %v179_v3 = vsel %vm175_vm2, %v163_v15, %v178_v52 }
  0xc5   :  { %v187_v25 = vsel %vm175_vm2, %v169_v17, %v186_v23  ;;  %v184_v26 = vsel %vm174_vm3, %v181_v20, %v183_v24  ;;  %v180_v58 = vsel %vm174_vm3, %v177_v2, %v179_v3 }
  0xc6   :  { %v188_v27 = vsel %vm174_vm3, %v185_v21, %v187_v25  ;;  %v214_v32 = vand.u32 65535, %v184_v26  ;;  %v215_v33 = vshrl.u32 %v184_v26, 16  ;;  %v234_v11 = vmul.u32 %v664_v19, %v180_v58 }
  0xc7   :  { %v192_v30 = vand.u32 65535, %v188_v27  ;;  %v193_v31 = vshrl.u32 %v188_v27, 16 }
  0xc8   :  { %v217_v36 = vmul.u32 %v215_v33, %v190_v28  ;;  %v218_v37 = vmul.u32 %v214_v32, %v191_v29  ;;  %v216_v41 = vmul.u32 %v214_v32, %v190_v28  ;;  %v219_v45 = vmul.u32 %v215_v33, %v191_v29 }
  0xc9   :  { %v195_v34 = vmul.u32 %v193_v31, %v190_v28  ;;  %v196_v35 = vmul.u32 %v192_v30, %v191_v29  ;;  %v194_v38 = vmul.u32 %v192_v30, %v190_v28  ;;  %v197_v40 = vmul.u32 %v193_v31, %v191_v29 }
  0xca   :  { %v220_v42 = vshll.u32 %v217_v36, 16  ;;  %v222_v47 = vshll.u32 %v218_v37, 16  ;;  %v221_v63 = vshrl.u32 %v217_v36, 16  ;;  %v223_v6 = vshrl.u32 %v218_v37, 16 }
  0xcb   :  { %v198_v39 = vshll.u32 %v195_v34, 16  ;;  %v200_v43 = vshll.u32 %v196_v35, 16  ;;  %v199_v57 = vshrl.u32 %v195_v34, 16  ;;  %v201_v4 = vshrl.u32 %v196_v35, 16 }
  0xcc   :  { %vm224_vm5 = vc.u32 %v216_v41, %v220_v42  ;;  %v226_v48 = vadd.s32 %v220_v42, %v216_v41  ;;  %v41_v42 = vld [vmem:[#allocation5 + $0x1] sm:$0x1] }
  0xcd   :  { %vm202_vm4 = vc.u32 %v194_v38, %v198_v39  ;;  %v204_v44 = vadd.s32 %v198_v39, %v194_v38  ;;  %v225_v51 = vsel %vm224_vm5, 1, %v603_v1  ;;  %vm140_vm13 = vcmp.ne.f32.partialorder %v41_v42, 0.0 }
  0xce   :  { %v203_v46 = vsel %vm202_vm4, 1, %v603_v1  ;;  %v227_v55 = vadd.s32 %v225_v51, %v219_v45  ;;  %vm228_vm7 = vc.u32 %v226_v48, %v222_v47  ;;  %v230_v9 = vadd.s32 %v226_v48, %v222_v47 }
  0xcf   :  { %v205_v50 = vadd.s32 %v203_v46, %v197_v40  ;;  %vm206_vm6 = vc.u32 %v204_v44, %v200_v43  ;;  %v229_v62 = vsel %vm228_vm7, 1, %v603_v1  ;;  %vm284_vm5 = vweird.f32 %v647_v49 }
  0xd0   :  { %v207_v54 = vsel %vm206_vm6, 1, %v603_v1  ;;  %v231_v0 = vadd.s32 %v229_v62, %v227_v55 }
  0xd1   :  { %v209_v59 = vadd.s32 %v207_v54, %v205_v50  ;;  %v450_v54 = vsel %vm140_vm13, 1, %v603_v1 }
  0xd2   :  { %v232_v7 = vadd.s32 %v231_v0, %v221_v63  ;;  %v451_v62 = vperm.slane %v450_v54, 0 }
  0xd3   :  { %v210_v5 = vadd.s32 %v209_v59, %v199_v57 }
  0xd4   :  { %v233_v61 = vadd.s32 %v232_v7, %v223_v6  ;;  %vm707_vm4 = vcmp.eq.s32.totalorder %v451_v62, 1 }
  0xd5   :  { %v211_v8 = vadd.s32 %v210_v5, %v201_v4 }
  0xd6   :  { %v237_v10 = vadd.s32 1, %v233_v61 }
  0xd7   :  { %vm236_vm8 = vc.u32 %v211_v8, %v230_v9  ;;  %v235_v60 = vadd.s32 %v230_v9, %v211_v8 }
  0xd8   :  { %v238_v12 = vsel %vm236_vm8, %v237_v10, %v233_v61 }
  0xd9   :  { %v239_v13 = vadd.s32 %v238_v12, %v234_v11 }
  0xdb   :  { %v240_v14 = vadd.s32 536870912, %v239_v13 }
  0xdd   :  { %v241_v16 = vshrl.u32 %v240_v14, 30 }
  0xdf   :  { %v242_v17 = vshll.u32 %v241_v16, 30  ;;  %v265_v37 = vsub.s32 4, %v241_v16 }
  0xe1   :  { %v243_v15 = vsub.s32 %v239_v13, %v242_v17  ;;  %v266_v41 = vsel %vm143_vm11, %v265_v37, %v241_v16 }
  0xe2   :  { %v268_v45 = vsel %vm142_vm12, 0, %v266_v41 }
  0xe3   :  { %vm244_vm9 = vcmp.lt.s32.totalorder %v243_v15, 0  ;;  %v245_v18 = vsub.s32 0, %v243_v15  ;;  %v439_v51 = vadd.s32 3, %v268_v45  ;;  %v285_v57 = vand.u32 3, %v268_v45 }
  0xe5   :  { %v246_v20 = vsel %vm244_vm9, %v245_v18, %v243_v15  ;;  %v440_v59 = vand.u32 3, %v439_v51  ;;  %vm286_vm14 = vcmp.lt.s32.totalorder %v285_v57, 2  ;;  %vm287_vm15 = vcmp.eq.s32.totalorder %v285_v57, 0 }
  0xe6   :  { %v247_v21 = vclz %v246_v20  ;;  %vm290_vm0 = vcmp.eq.s32.totalorder %v285_v57, 2 }
  0xe7   :  { %vm441_vm1 = vcmp.lt.s32.totalorder %v440_v59, 2  ;;  %vm442_vm2 = vcmp.eq.s32.totalorder %v440_v59, 0  ;;  %vm445_vm3 = vcmp.eq.s32.totalorder %v440_v59, 2 }
  0xe8   :  { %v474_v22 = vadd.s32 4294967294, %v247_v21 }
  0xea   :  { %vm475_vm10 = vcmp.lt.s32.totalorder %v474_v22, 0 }
  0xeb   :  { %v250_v23 = vsel %vm475_vm10, 0, %v474_v22 }
  0xec   :  { %v251_v24 = vsub.s32 32, %v250_v23  ;;  %v255_v25 = vsub.s32 4294967266, %v250_v23  ;;  %v252_v26 = vshll.u32 %v243_v15, %v250_v23 }
  0xee   :  { %v253_v27 = vshrl.u32 %v235_v60, %v251_v24  ;;  %v256_v28 = vadd.s32 127, %v255_v25 }
  0xf0   :  { %v254_v19 = vor.u32 %v253_v27, %v252_v26  ;;  %v257_v29 = vshll.u32 %v256_v28, 23 }
  0xf2   :  { %v258_v30 = vor.u32 4788187, %v257_v29  ;;  %v261_v32 = vcvt.s32.f32 %v254_v19 }
  0xf4   :  { %v259_v31 = vand.u32 2147483647, %v258_v30 }
  0xf6   :  { %v262_v33 = vmul.f32 %v261_v32, %v259_v31 }
  0xf8   :  { %v263_v34 = vxor.u32 2147483648, %v262_v33 }
  0xfa   :  { %v264_v35 = vsel %vm143_vm11, %v263_v34, %v262_v33 }
  0xfb   :  { %v267_v36 = vsel %vm142_vm12, %v647_v49, %v264_v35 }
  0xfc   :  { %v269_v38 = vmul.f32 %v267_v36, %v267_v36 }
  0xfe   :  { %v270_v39 = vmul.f32 -0.001358992, %v269_v38  ;;  %v277_v40 = vmul.f32 -0.00019511016, %v269_v38 }
 0x100   :  { %v271_v43 = vadd.f32 0.041655596, %v270_v39  ;;  %v278_v44 = vadd.f32 0.008332121, %v277_v40 }
 0x102   :  { %v272_v46 = vmul.f32 %v271_v43, %v269_v38  ;;  %v279_v47 = vmul.f32 %v278_v44, %v269_v38 }
 0x104   :  { %v273_v48 = vadd.f32 -0.4999988, %v272_v46  ;;  %v280_v50 = vadd.f32 -0.16666654, %v279_v47 }
 0x106   :  { %v274_v52 = vmul.f32 %v273_v48, %v269_v38  ;;  %v281_v53 = vmul.f32 %v280_v50, %v269_v38 }
 0x108   :  { %v275_v55 = vadd.f32 1.0, %v274_v52  ;;  %v282_v56 = vadd.f32 1.0, %v281_v53 }
 0x10a   :  { %v283_v63 = vmul.f32 %v282_v56, %v267_v36  ;;  %v291_v0 = vxor.u32 2147483648, %v275_v55 }
 0x10c   :  { %v288_v2 = vxor.u32 2147483648, %v283_v63  ;;  %v292_v4 = vsel %vm290_vm0, %v291_v0, %v283_v63  ;;  %v447_v6 = vsel %vm445_vm3, %v291_v0, %v283_v63 }
 0x10e   :  { %v289_v1 = vsel %vm287_vm15, %v275_v55, %v288_v2  ;;  %v444_v5 = vsel %vm442_vm2, %v275_v55, %v288_v2 }
 0x10f   :  { %v293_v7 = vsel %vm286_vm14, %v289_v1, %v292_v4  ;;  %v448_v8 = vsel %vm441_vm1, %v444_v5, %v447_v6 }
 0x110   :  { %v294_v9 = vsel %vm284_vm5, nan, %v293_v7  ;;  %v449_v58 = vsel %vm284_vm5, nan, %v448_v8 }
 0x111   :  { %v453_v61 = vsel %vm707_vm4, %v294_v9, %v449_v58 }
 0x112   :  { %454 = vst [vmem:[#allocation7] sm:$0xff] %v453_v61 }
 0x113   :  { %465 = dma.vmem_to_hbm [thread:$0]  %s461_s1, 128, %s463_s21, [#allocation4]  }
 0x114   :  { %598 = dma.done.wait [#allocation4], 128  }
 0x115   :  { %599 = vsyncadd [#allocation4], 4294967168 }
 0x116   :  { %470 = vsyncpa [#allocation3], 1 }
 0x117   :  { %471 = vsyncpa [#allocation6], 1 }
 0x118   :  { %472 = vsyncpa [#allocation4], 1 }

</bundles_post_ra>
